<compile_context>
chip_gen: v5e
topology: v5e:2x2
jax: 0.10.0
libtpu: 0.0.40
codegen_flags: <defaults>
</compile_context>

<pallas_src>
import jax
import jax.numpy as jnp
from jax.experimental import pallas as pl
from jax.experimental.pallas import tpu as pltpu


# --------------------------------------------------------------------------- #
# helpers
# --------------------------------------------------------------------------- #
def _round_up(x: int, m: int) -> int:
    return (x + m - 1) // m * m


def _row_granule(dtype) -> int:
    """Sublane packing granule for the second-minor dim of a tile."""
    itemsize = jnp.dtype(dtype).itemsize
    if itemsize >= 4:
        return 8
    if itemsize == 2:
        return 16
    return 32          # int8 / fp8


def _vmem_capacity_bytes() -> int:
    """Physical VMEM per TensorCore; conservative fallback if unknown."""
    try:
        info = pltpu.get_tpu_info()
        cap = int(getattr(info, "vmem_capacity_bytes", 0))
        if cap > 0:
            return cap
    except Exception:
        pass
    return 64 << 20    # v7x-sized lower bound (v5e/v6e have 128 MiB)


def _pick_tiles(F, H, x_isize, w_isize, out_isize, *, granule,
                tm_max, tn_max, tk_max, budget):
    """Choose (TM, TN, TK) so the double-buffered footprint fits `budget`."""
    Hp = _round_up(H, 128)
    Fp = _round_up(F, 128)
    TM = _round_up(tm_max, granule)
    TN = min(Hp, _round_up(tn_max, 128))
    TK = Fp if Fp <= tk_max else _round_up(tk_max, 128)

    def footprint(tm, tn, tk, ksteps):
        f = 2 * tm * tk * x_isize          # x tile, double buffered
        f += 2 * tk * tn * w_isize         # W tile, double buffered
        f += 2 * tn * 4                    # bias (f32), double buffered
        f += 2 * tm * tn * out_isize       # out tile, double buffered
        if ksteps > 1:
            f += tm * tn * 4               # f32 accumulator scratch
        return f

    while True:
        ksteps = -(-Fp // TK)
        if footprint(TM, TN, TK, ksteps) <= budget:
            break
        if TN > 128 and TN >= TK and TN >= TM:
            TN = _round_up(TN // 2, 128)
        elif TK > 128 and TK >= TM:
            TK = _round_up(TK // 2, 128)
        elif TM > granule:
            TM = max(granule, _round_up(TM // 2, granule))
        else:
            break                          # smallest tiles; let compiler cope
    return TM, TN, TK


# --------------------------------------------------------------------------- #
# kernels
# --------------------------------------------------------------------------- #
def _dense_relu_kernel_single(x_ref, w_ref, b_ref, o_ref):
    # Single K step: no accumulator scratch needed.
    y = jnp.dot(x_ref[...], w_ref[...],
                preferred_element_type=jnp.float32) + b_ref[...]
    o_ref[...] = jnp.maximum(y, 0.0).astype(o_ref.dtype)


def _dense_relu_kernel_acc(x_ref, w_ref, b_ref, o_ref, acc_ref):
    # grid = (i: batch, j: output cols, k: reduction), k innermost.
    k = pl.program_id(2)

    @pl.when(k == 0)
    def _init():
        acc_ref[...] = jnp.zeros_like(acc_ref)

    acc_ref[...] += jnp.dot(x_ref[...], w_ref[...],
                            preferred_element_type=jnp.float32)

    @pl.when(k == pl.num_programs(2) - 1)
    def _finalize():
        y = acc_ref[...] + b_ref[...]
        o_ref[...] = jnp.maximum(y, 0.0).astype(o_ref.dtype)


# --------------------------------------------------------------------------- #
# wrapper / factory
# --------------------------------------------------------------------------- #
def make_dnn_embedding(w, b, *, compute_dtype=None, out_dtype=None,
                       tm_max=512, tn_max=1024, tk_max=512):
    """Build relu(x @ w + b) forward fn with weights padded/cast ONCE.

    compute_dtype: optional operand cast (jnp.bfloat16 for v6e/v7x MXU,
    jnp.float8_e4m3fn on v7x); accumulation is always f32.
    out_dtype: optional output dtype (e.g. bf16 to halve writeback);
    defaults to x.dtype at call time.
    """
    F, H = w.shape
    assert b.size == H, (b.shape, H)

    cd = jnp.dtype(compute_dtype) if compute_dtype is not None else None
    granule = _row_granule(cd if cd is not None else jnp.dtype(jnp.float32))
    x_isize = cd.itemsize if cd is not None else 4
    w_isize = cd.itemsize if cd is not None else jnp.dtype(w.dtype).itemsize
    out_isize = jnp.dtype(out_dtype).itemsize if out_dtype is not None else 4

    cap = _vmem_capacity_bytes()
    budget = int(cap * 0.40)               # tile footprint budget
    vmem_limit = int(cap * 0.75)           # scoped VMEM limit for Mosaic

    TM_plan, TN, TK = _pick_tiles(
        F, H, x_isize, w_isize, out_isize, granule=granule,
        tm_max=tm_max, tn_max=tn_max, tk_max=tk_max, budget=budget)

    Hp = _round_up(_round_up(H, 128), TN)
    Fp = _round_up(_round_up(F, 128), TK)
    k_steps = Fp // TK

    # ---- pad / cast weights & bias once (hoisted out of per-call path) ----
    wp = jnp.pad(jnp.asarray(w), ((0, Fp - F), (0, Hp - H)))
    if cd is not None:
        wp = wp.astype(cd)
    bp = jnp.pad(jnp.reshape(jnp.asarray(b), (1, H)).astype(jnp.float32),
                 ((0, 0), (0, Hp - H)))

    def forward(x):
        B, Fx = x.shape
        assert Fx == F, (Fx, F)
        odt = jnp.dtype(out_dtype) if out_dtype is not None else x.dtype

        xc = x.astype(cd) if cd is not None else x
        TM = min(_round_up(B, granule), TM_plan)
        Bp = _round_up(B, TM)
        xp = jnp.pad(xc, ((0, Bp - B), (0, Fp - F)))

        grid_i = Bp // TM
        grid_j = Hp // TN

        # Advisory cost: W is re-streamed per batch tile, x per output tile.
        cost = pl.CostEstimate(
            flops=2 * Bp * Fp * Hp,
            transcendentals=0,
            bytes_accessed=int(Bp * Fp * xp.dtype.itemsize * grid_j
                               + Fp * Hp * wp.dtype.itemsize * grid_i
                               + Hp * 4
                               + Bp * Hp * odt.itemsize),
        )

        if k_steps > 1:
            cparams = pltpu.CompilerParams(
                dimension_semantics=("parallel", "parallel", "arbitrary"),
                vmem_limit_bytes=vmem_limit)
            out = pl.pallas_call(
                _dense_relu_kernel_acc,
                out_shape=jax.ShapeDtypeStruct((Bp, Hp), odt),
                grid=(grid_i, grid_j, k_steps),
                in_specs=[
                    pl.BlockSpec((TM, TK), lambda i, j, k: (i, k)),   # x
                    pl.BlockSpec((TK, TN), lambda i, j, k: (k, j)),   # W
                    pl.BlockSpec((1, TN), lambda i, j, k: (0, j)),    # bias
                ],
                out_specs=pl.BlockSpec((TM, TN), lambda i, j, k: (i, j)),
                scratch_shapes=[pltpu.VMEM((TM, TN), jnp.float32)],
                compiler_params=cparams,
                cost_estimate=cost,
            )(xp, wp, bp)
        else:
            # Single-K specialization: whole reduction in one tile, no scratch.
            cparams = pltpu.CompilerParams(
                dimension_semantics=("parallel", "parallel"),
                vmem_limit_bytes=vmem_limit)
            out = pl.pallas_call(
                _dense_relu_kernel_single,
                out_shape=jax.ShapeDtypeStruct((Bp, Hp), odt),
                grid=(grid_i, grid_j),
                in_specs=[
                    pl.BlockSpec((TM, Fp), lambda i, j: (i, 0)),      # x
                    pl.BlockSpec((Fp, TN), lambda i, j: (0, j)),      # W
                    pl.BlockSpec((1, TN), lambda i, j: (0, j)),       # bias
                ],
                out_specs=pl.BlockSpec((TM, TN), lambda i, j: (i, j)),
                compiler_params=cparams,
                cost_estimate=cost,
            )(xp, wp, bp)

        return out[:B, :H]

    return forward


def dnn_embedding_forward(x, w, b, **kwargs):
    """One-shot convenience wrapper (factory hoisting not reused)."""
    return make_dnn_embedding(w, b, **kwargs)(x)


# --------------------------------------------------------------------------- #
# demo / correctness check
# --------------------------------------------------------------------------- #
if __name__ == "__main__":
    # Shapes implied by the module: F input features, embedding dim = F // 2.
    B, F = 8, 32
    H = F // 2

    key = jax.random.PRNGKey(0)
    kx, kw, kb = jax.random.split(key, 3)
    x = jax.random.normal(kx, (B, F), dtype=jnp.float32)
    # TODO(synk): the Keras training loop / .h5 checkpoint load has no Pallas
    # equivalent; deterministic synthetic "trained" Dense weights are used.
    w = jax.random.normal(kw, (F, H), dtype=jnp.float32) * 0.1
    b = jax.random.normal(kb, (H,), dtype=jnp.float32) * 0.1

    # f32 path (exact check against plain JAX).
    fwd_f32 = make_dnn_embedding(w, b)
    out = jax.block_until_ready(fwd_f32(x))
    ref = jnp.maximum(x @ w + b[None, :], 0.0)
    assert out.shape == (B, H)
    assert jnp.allclose(out, ref, atol=1e-5, rtol=1e-5)

    # bf16 operand path (v6e/v7x MXU), f32 accumulation, f32 output.
    fwd_bf16 = make_dnn_embedding(w, b, compute_dtype=jnp.bfloat16)
    out_bf16 = jax.block_until_ready(fwd_bf16(x))
    ref_bf16 = jnp.maximum(
        jnp.dot(x.astype(jnp.bfloat16), w.astype(jnp.bfloat16),
                preferred_element_type=jnp.float32) + b[None, :], 0.0)
    assert out_bf16.shape == (B, H)
    assert jnp.allclose(out_bf16, ref_bf16, atol=5e-2, rtol=5e-2)

    print("KERNEL_OK")
</pallas_src>

<mosaic_0001>
module attributes {stable_mosaic.version = 11 : i64} {
  func.func @_dense_relu_kernel_single(%arg0: i32, %arg1: i32, %arg2: memref<8x128xf32, #tpu.memory_space<vmem>>, %arg3: memref<128x128xf32, #tpu.memory_space<vmem>>, %arg4: memref<1x128xf32, #tpu.memory_space<vmem>>, %arg5: memref<8x128xf32, #tpu.memory_space<vmem>>) attributes {dimension_semantics = [#tpu.dimension_semantics<parallel>, #tpu.dimension_semantics<parallel>], iteration_bounds = array<i64: 1, 1>, scalar_prefetch = 0 : i64, scratch_operands = 0 : i64, tpu.core_type = #tpu.core_type<tc>, window_params = [{transform_indices = @transform_0, window_bounds = array<i64: 8, 128>}, {transform_indices = @transform_1, window_bounds = array<i64: 128, 128>}, {transform_indices = @transform_2, window_bounds = array<i64: 1, 128>}, {transform_indices = @transform_3, window_bounds = array<i64: 8, 128>}]} {
    %c0 = arith.constant 0 : index
    %c0_0 = arith.constant 0 : index
    %0 = vector.load %arg2[%c0, %c0_0] : memref<8x128xf32, #tpu.memory_space<vmem>>, vector<8x128xf32>
    %c0_1 = arith.constant 0 : index
    %c0_2 = arith.constant 0 : index
    %1 = vector.load %arg3[%c0_1, %c0_2] : memref<128x128xf32, #tpu.memory_space<vmem>>, vector<128x128xf32>
    %cst = arith.constant dense<0.000000e+00> : vector<8x128xf32>
    %2 = tpu.matmul %0, %1, %cst {dimension_numbers = #tpu.dot_dimension_numbers<[1], [0], [0], [1], [0, 0, 1, 1], [], []>} : vector<8x128xf32>, vector<128x128xf32>, vector<8x128xf32> -> vector<8x128xf32>
    %c0_3 = arith.constant 0 : index
    %c0_4 = arith.constant 0 : index
    %3 = vector.load %arg4[%c0_3, %c0_4] : memref<1x128xf32, #tpu.memory_space<vmem>>, vector<1x128xf32>
    %4 = vector.broadcast %3 : vector<1x128xf32> to vector<8x128xf32>
    %5 = arith.addf %2, %4 : vector<8x128xf32>
    %cst_5 = arith.constant 0.000000e+00 : f32
    %6 = vector.broadcast %cst_5 : f32 to vector<8x128xf32>
    %7 = arith.maximumf %5, %6 : vector<8x128xf32>
    %c0_6 = arith.constant 0 : index
    %c0_7 = arith.constant 0 : index
    %8 = vector.load %arg5[%c0_6, %c0_7] : memref<8x128xf32, #tpu.memory_space<vmem>>, vector<8x128xf32>
    tpu.vector_store %arg5[%c0_6, %c0_7], %7 {strides = array<i32>} : memref<8x128xf32, #tpu.memory_space<vmem>>, vector<8x128xf32>,
    return
  }
  func.func @transform_0(%arg0: i32, %arg1: i32) -> (i32, i32) {
    %c0_i32 = arith.constant 0 : i32
    %c0_i32_0 = arith.constant 0 : i32
    return %arg0, %c0_i32 : i32, i32
  }
  func.func @transform_1(%arg0: i32, %arg1: i32) -> (i32, i32) {
    %c0_i32 = arith.constant 0 : i32
    %c0_i32_0 = arith.constant 0 : i32
    return %c0_i32, %arg1 : i32, i32
  }
  func.func @transform_2(%arg0: i32, %arg1: i32) -> (i32, i32) {
    %c0_i32 = arith.constant 0 : i32
    %c0_i32_0 = arith.constant 0 : i32
    return %c0_i32, %arg1 : i32, i32
  }
  func.func @transform_3(%arg0: i32, %arg1: i32) -> (i32, i32) {
    %c0_i32 = arith.constant 0 : i32
    return %arg0, %arg1 : i32, i32
  }
}

</mosaic_0001>

<bundles_post_ra>
// kernel: tpu_custom_call.1
= control target key start
LH: loop header
LB: loop body
LE: loop exit
PB: predicated region body
PF: predicated region fallthrough
CT: control target
= control target key end

     0   :  { %8 = vsyncpa [#allocation3], 0  ;;  %s227_s0 = inlined_call_operand.hbm [shape: f32[8,128], index: 0, kind: input, shape index: {}]   ;;  %s228_s1 = inlined_call_operand.hbm [shape: f32[128,128], index: 1, kind: input, shape index: {}]   ;;  %s229_s2 = inlined_call_operand.vmem [shape: f32[1,128], index: 2, kind: input, shape index: {}]   ;;  %s230_s3 = inlined_call_operand.hbm [shape: f32[8,128], index: 3, kind: output, shape index: {}]  }
   0x1   :  { %9 = vsyncpa [#allocation6], 0 }
   0x2   :  { %10 = vsyncpa [#allocation4], 0  ;;  %s16_s14 = sshll.u32 %s227_s0, 4  ;;  %s190_s15 = smov [#allocation2]   ;;  %s17_s14 = int_to_ptr.hbm [resolvable:$true] %s16_s14 }
   0x3   :  { %s18_s16 = sshll.u32 %s190_s15, 4  ;;  %s26_s19 = sshll.u32 %s228_s1, 4  ;;  %s19_s16 = int_to_ptr.vmem [resolvable:$true] %s18_s16  ;;  %s27_s19 = int_to_ptr.hbm [resolvable:$true] %s26_s19 }
   0x4   :  { %21 = dma.hbm_to_vmem [thread:$0]  %s17_s14, 128, %s19_s16, [#allocation3]  }
   0x5   :  { %s191_s20 = smov [#allocation5]   ;;  %s192_s22 = smov 128  }
   0x6   :  { %s28_s21 = sshll.u32 %s191_s20, 4  ;;  %s193_s23 = smov 8   ;;  %s29_s21 = int_to_ptr.vmem [resolvable:$true] %s28_s21 }
   0x7   :  { %34 = dma.hbm_to_vmem [thread:$0]  %s27_s19, 2048, %s29_s21, [#allocation6], %s192_s22, %s192_s22, %s193_s23  }
   0x8   :  { %184 = dma.done.wait [#allocation3], 128  }
   0x9   :  { %185 = vsyncadd [#allocation3], 4294967168 }
   0xa   :  { %186 = dma.done.wait [#allocation6], 2048  }
   0xb   :  { %187 = vsyncadd [#allocation6], 4294965248  ;;  %v61_v0 = vld [vmem:[#allocation5 + $0x78] sm:$0xff]  ;;  %v60_v1 = vld [vmem:[#allocation5 + $0x70] sm:$0xff]  ;;  %s194_s24 = smov [#allocation7]   ;;  %s95_s28 = sshll.u32 %s230_s3, 4  ;;  %s96_s28 = int_to_ptr.hbm [resolvable:$true] %s95_s28 }
   0xc   :  { %66 = vmatpush.msra.mxu0 %v61_v0  ;;  %v59_v2 = vld [vmem:[#allocation5 + $0x68] sm:$0xff]  ;;  %v58_v3 = vld [vmem:[#allocation5 + $0x60] sm:$0xff]  ;;  %v57_v4 = vld [vmem:[#allocation5 + $0x58] sm:$0xff]  ;;  %s93_s25 = sshll.u32 %s194_s24, 4  ;;  %s94_s25 = int_to_ptr.vmem [resolvable:$true] %s93_s25 }
   0xd   :  { %v56_v5 = vld [vmem:[#allocation5 + $0x50] sm:$0xff]  ;;  %v55_v6 = vld [vmem:[#allocation5 + $0x48] sm:$0xff]  ;;  %v54_v7 = vld [vmem:[#allocation5 + $0x40] sm:$0xff] }
   0xe   :  { %67 = vmatpush.msra.mxu0 %v60_v1  ;;  %v53_v8 = vld [vmem:[#allocation5 + $0x38] sm:$0xff]  ;;  %v52_v9 = vld [vmem:[#allocation5 + $0x30] sm:$0xff]  ;;  %v51_v10 = vld [vmem:[#allocation5 + $0x28] sm:$0xff] }
   0xf   :  { %v50_v11 = vld [vmem:[#allocation5 + $0x20] sm:$0xff]  ;;  %v49_v12 = vld [vmem:[#allocation5 + $0x18] sm:$0xff]  ;;  %v48_v13 = vld [vmem:[#allocation5 + $0x10] sm:$0xff] }
  0x10   :  { %68 = vmatpush.msra.mxu0 %v59_v2  ;;  %v47_v14 = vld [vmem:[#allocation5 + $0x8] sm:$0xff]  ;;  %v46_v15 = vld [vmem:[#allocation5] sm:$0xff]  ;;  %v45_v16 = vld [vmem:[#allocation2] sm:$0xff] }
  0x11   :  { %v111_v17 = vld [vmem:[%s229_s2] ss:$0 sm:$0xff] }
  0x12   :  { %69 = vmatpush.msra.mxu0 %v58_v3 }
  0x14   :  { %70 = vmatpush.msra.mxu0 %v57_v4 }
  0x16   :  { %71 = vmatpush.msra.mxu0 %v56_v5 }
  0x18   :  { %72 = vmatpush.msra.mxu0 %v55_v6 }
  0x1a   :  { %73 = vmatpush.msra.mxu0 %v54_v7 }
  0x1c   :  { %74 = vmatpush.msra.mxu0 %v53_v8 }
  0x1e   :  { %75 = vmatpush.msra.mxu0 %v52_v9 }
  0x20   :  { %76 = vmatpush.msra.mxu0 %v51_v10 }
  0x22   :  { %77 = vmatpush.msra.mxu0 %v50_v11 }
  0x24   :  { %78 = vmatpush.msra.mxu0 %v49_v12 }
  0x26   :  { %79 = vmatpush.msra.mxu0 %v48_v13 }
  0x28   :  { %80 = vmatpush.msra.mxu0 %v47_v14 }
  0x2a   :  { %81 = vmatpush.msra.mxu0 %v46_v15 }
  0x2b   :  { %82 = vmatmul.f32.vlgmr.msra.gmra.mxu0 %v45_v16 }
  0xa8   :  { %v83_v18 = vpop.f32.mrf.mxu0 }
  0xa9   :  { %v84_v19 = vadd.f32 %v111_v17, %v83_v18 }
  0xab   :  { %v86_v20 = vmax.f32 %v84_v19, 0.0 }
  0xad   :  { %87 = vst [vmem:[#allocation7] sm:$0xff] %v86_v20 }
  0xae   :  { %98 = dma.vmem_to_hbm [thread:$0]  %s94_s25, 128, %s96_s28, [#allocation4]  }
  0xaf   :  { %188 = dma.done.wait [#allocation4], 128  }
  0xb0   :  { %189 = vsyncadd [#allocation4], 4294967168 }
  0xb1   :  { %103 = vsyncpa [#allocation3], 1 }
  0xb2   :  { %104 = vsyncpa [#allocation6], 1 }
  0xb3   :  { %105 = vsyncpa [#allocation4], 1 }

</bundles_post_ra>
